<compile_context>
chip_gen: v7x
topology: tpu7x:2x2x1
jax: 0.10.0
libtpu: 0.0.40
codegen_flags: <defaults>
</compile_context>

<pallas_src>
import jax
import jax.numpy as jnp
from jax.experimental import pallas as pl
from jax.experimental.pallas import tpu as pltpu


_MAX_TM = 2048  # batch-tile cap (per-block working set << VMEM on all gens)


def _round_up(x, m):
    return ((x + m - 1) // m) * m


def _pick_tm(batch):
    """Batch tile: single block for small batches; >=4 grid steps (multiple of
    128 lanes) for large ones so v7x's two TensorCores both get work."""
    if batch <= 512:
        return batch
    tm = min(_MAX_TM, _round_up(pl.cdiv(batch, 4), 128))
    return min(tm, batch)


def actor_critic_kernel(
    state_t_ref,  # (S, tm)            state, batch on lanes
    w1t_ref,      # (H_PAD, S)         fc1 weights, transposed, hidden padded
    wht_ref,      # (OUT_PAD, H_PAD)   fused [policy; value; 0] head, transposed
    bias_ref,     # (H_PAD + OUT_PAD, 1)  column biases [b1 ; b_head]
    out_ref,      # (OUT_PAD, tm)      rows: [mean_0..mean_{A-1}, value, 0...]
):
    h_pad = w1t_ref.shape[0]
    b1 = bias_ref[:h_pad, :]   # (H_PAD, 1)   split at 128 -> sublane-tile aligned
    bh = bias_ref[h_pad:, :]   # (OUT_PAD, 1)

    # fc1 + ReLU: hidden on sublanes, batch on lanes (MXU matmul, VPU max)
    h_t = jnp.dot(w1t_ref[...], state_t_ref[...],
                  preferred_element_type=jnp.float32) + b1
    h_t = jnp.maximum(h_t, 0.0)

    # fused policy + value head: single MXU push, lane-dense (8, tm) store
    out_ref[...] = jnp.dot(wht_ref[...], h_t,
                           preferred_element_type=jnp.float32) + bh


@jax.jit
def actor_critic_forward(state, params):
    """Returns (mean, std, value) matching ActorCriticNetwork.forward."""
    B, S = state.shape
    A = params["log_std"].shape[0]
    HP = params["w1_t"].shape[0]      # padded hidden (128)
    OP = params["wh_t"].shape[0]      # padded head rows (8)

    # Batch onto the lane axis: lane-dense input blocks AND lane-dense output
    # stores with only OUT_PAD=8 rows of writeback per batch element.
    state_t = state.T                 # (S, B)

    tm = _pick_tm(B)
    grid = (pl.cdiv(B, tm),)

    flops = 2 * B * (S * HP + HP * OP)
    bytes_accessed = 4 * (B * S + HP * S + OP * HP + (HP + OP) + OP * B)

    out_t = pl.pallas_call(
        actor_critic_kernel,
        out_shape=jax.ShapeDtypeStruct((OP, B), jnp.float32),
        grid_spec=pl.GridSpec(
            grid=grid,
            in_specs=[
                pl.BlockSpec((S, tm), lambda i: (0, i)),        # state_t: tiled over batch lanes
                pl.BlockSpec((HP, S), lambda i: (0, 0)),        # w1_t: resident
                pl.BlockSpec((OP, HP), lambda i: (0, 0)),       # fused head: resident
                pl.BlockSpec((HP + OP, 1), lambda i: (0, 0)),   # packed column biases
            ],
            out_specs=pl.BlockSpec((OP, tm), lambda i: (0, i)),
        ),
        compiler_params=pltpu.CompilerParams(
            dimension_semantics=("parallel",),
        ),
        cost_estimate=pl.CostEstimate(
            flops=flops, transcendentals=0, bytes_accessed=bytes_accessed
        ),
    )(state_t, params["w1_t"], params["wh_t"], params["bias"])

    mean = out_t[:A, :].T             # (B, A)
    value = out_t[A:A + 1, :].T       # (B, 1)
    # std = exp(log_std): batch-independent, A elements -> cheap XLA op outside
    std = jnp.exp(params["log_std"])
    return mean, std, value


def init_params(key, state_dim, action_dim, hidden_size=64):
    """Deterministic init mirroring nn.Linear's default U(-1/sqrt(fan_in), +)."""
    ks = jax.random.split(key, 6)

    def linear(kw, kb, fan_in, fan_out):
        bound = 1.0 / jnp.sqrt(float(fan_in))
        w = jax.random.uniform(kw, (fan_in, fan_out), jnp.float32, -bound, bound)
        b = jax.random.uniform(kb, (1, fan_out), jnp.float32, -bound, bound)
        return w, b

    w1, b1 = linear(ks[0], ks[1], state_dim, hidden_size)    # (S,H), (1,H)
    wp, bp = linear(ks[2], ks[3], hidden_size, action_dim)   # (H,A), (1,A)
    wv, bv = linear(ks[4], ks[5], hidden_size, 1)            # (H,1), (1,1)
    log_std = jnp.zeros((action_dim,), jnp.float32)          # torch.zeros(action_dim)

    h_pad = _round_up(hidden_size, 128)       # lane-dense head contraction
    out_pad = _round_up(action_dim + 1, 8)    # sublane-aligned fused head rows

    # Transposed fc1 weights, hidden zero-padded to h_pad on sublanes.
    w1_t = jnp.zeros((h_pad, state_dim), jnp.float32)
    w1_t = w1_t.at[:hidden_size, :].set(w1.T)

    # Fused, transposed head: rows [0:A] = policy, row A = value, rest zero.
    # NOTE: padded rows/cols must stay zero (they are sliced off anyway).
    wh_t = jnp.zeros((out_pad, h_pad), jnp.float32)
    wh_t = wh_t.at[:action_dim, :hidden_size].set(wp.T)
    wh_t = wh_t.at[action_dim, :hidden_size].set(wv[:, 0])

    # Packed column-bias slab [b1 ; b_head]; split offset h_pad is 128-aligned.
    bias = jnp.zeros((h_pad + out_pad, 1), jnp.float32)
    bias = bias.at[:hidden_size, 0].set(b1[0])
    bias = bias.at[h_pad:h_pad + action_dim, 0].set(bp[0])
    bias = bias.at[h_pad + action_dim, 0].set(bv[0, 0])

    return dict(
        # kernel operands
        w1_t=w1_t, wh_t=wh_t, bias=bias, log_std=log_std,
        # raw components kept only for the pure-JAX reference check
        w1=w1, b1=b1, wp=wp, bp=bp, wv=wv, bv=bv,
    )


def reference_forward(state, params):
    """Pure-JAX reference for correctness checking."""
    h = jnp.maximum(state @ params["w1"] + params["b1"], 0.0)
    mean = h @ params["wp"] + params["bp"]
    value = h @ params["wv"] + params["bv"]
    std = jnp.exp(params["log_std"])
    return mean, std, value


if __name__ == "__main__":
    # Small, forward-consistent shapes: state_dim=16, action_dim=4, hidden=64, batch=8
    B, STATE_DIM, ACTION_DIM, HIDDEN = 8, 16, 4, 64

    key = jax.random.PRNGKey(0)
    k_params, k_state = jax.random.split(key)

    params = init_params(k_params, STATE_DIM, ACTION_DIM, HIDDEN)
    state = jax.random.normal(k_state, (B, STATE_DIM), jnp.float32)

    mean, std, value = actor_critic_forward(state, params)
    jax.block_until_ready((mean, std, value))

    # sanity check against pure-JAX reference
    r_mean, r_std, r_value = reference_forward(state, params)
    assert mean.shape == (B, ACTION_DIM)
    assert std.shape == (ACTION_DIM,)
    assert value.shape == (B, 1)
    assert jnp.allclose(mean, r_mean, atol=1e-5, rtol=1e-5)
    assert jnp.allclose(std, r_std, atol=1e-6, rtol=1e-6)
    assert jnp.allclose(value, r_value, atol=1e-5, rtol=1e-5)

    print("KERNEL_OK")
</pallas_src>

<mosaic_0001>
module attributes {stable_mosaic.version = 11 : i64} {
  func.func @actor_critic_kernel(%arg0: i32, %arg1: memref<16x8xf32, #tpu.memory_space<vmem>>, %arg2: memref<128x16xf32, #tpu.memory_space<vmem>>, %arg3: memref<8x128xf32, #tpu.memory_space<vmem>>, %arg4: memref<136x1xf32, #tpu.memory_space<vmem>>, %arg5: memref<8x8xf32, #tpu.memory_space<vmem>>) attributes {dimension_semantics = [#tpu.dimension_semantics<parallel>], iteration_bounds = array<i64: 1>, scalar_prefetch = 0 : i64, scratch_operands = 0 : i64, tpu.core_type = #tpu.core_type<tc>, window_params = [{transform_indices = @transform_0, window_bounds = array<i64: 16, 8>}, {pipeline_mode = #tpu.pipeline_mode<synchronous>, transform_indices = @transform_1, window_bounds = array<i64: 128, 16>}, {pipeline_mode = #tpu.pipeline_mode<synchronous>, transform_indices = @transform_2, window_bounds = array<i64: 8, 128>}, {pipeline_mode = #tpu.pipeline_mode<synchronous>, transform_indices = @transform_3, window_bounds = array<i64: 136, 1>}, {transform_indices = @transform_4, window_bounds = array<i64: 8, 8>}]} {
    %c0 = arith.constant 0 : index
    %c0_0 = arith.constant 0 : index
    %0 = vector.load %arg4[%c0, %c0_0] : memref<136x1xf32, #tpu.memory_space<vmem>>, vector<128x1xf32>
    %c128 = arith.constant 128 : index
    %c0_1 = arith.constant 0 : index
    %1 = vector.load %arg4[%c128, %c0_1] : memref<136x1xf32, #tpu.memory_space<vmem>>, vector<8x1xf32>
    %c0_2 = arith.constant 0 : index
    %c0_3 = arith.constant 0 : index
    %2 = vector.load %arg2[%c0_2, %c0_3] : memref<128x16xf32, #tpu.memory_space<vmem>>, vector<128x16xf32>
    %c0_4 = arith.constant 0 : index
    %c0_5 = arith.constant 0 : index
    %3 = vector.load %arg1[%c0_4, %c0_5] : memref<16x8xf32, #tpu.memory_space<vmem>>, vector<16x8xf32>
    %cst = arith.constant dense<0.000000e+00> : vector<128x8xf32>
    %4 = tpu.matmul %2, %3, %cst {dimension_numbers = #tpu.dot_dimension_numbers<[1], [0], [0], [1], [0, 0, 1, 1], [], []>} : vector<128x16xf32>, vector<16x8xf32>, vector<128x8xf32> -> vector<128x8xf32>
    %5 = vector.broadcast %0 : vector<128x1xf32> to vector<128x8xf32>
    %6 = arith.addf %4, %5 : vector<128x8xf32>
    %cst_6 = arith.constant 0.000000e+00 : f32
    %7 = vector.broadcast %cst_6 : f32 to vector<128x8xf32>
    %8 = arith.maximumf %6, %7 : vector<128x8xf32>
    %c0_7 = arith.constant 0 : index
    %c0_8 = arith.constant 0 : index
    %9 = vector.load %arg3[%c0_7, %c0_8] : memref<8x128xf32, #tpu.memory_space<vmem>>, vector<8x128xf32>
    %cst_9 = arith.constant dense<0.000000e+00> : vector<8x8xf32>
    %10 = tpu.matmul %9, %8, %cst_9 {dimension_numbers = #tpu.dot_dimension_numbers<[1], [0], [0], [1], [0, 0, 1, 1], [], []>} : vector<8x128xf32>, vector<128x8xf32>, vector<8x8xf32> -> vector<8x8xf32>
    %11 = vector.broadcast %1 : vector<8x1xf32> to vector<8x8xf32>
    %12 = arith.addf %10, %11 : vector<8x8xf32>
    %c0_10 = arith.constant 0 : index
    %c0_11 = arith.constant 0 : index
    %13 = vector.load %arg5[%c0_10, %c0_11] : memref<8x8xf32, #tpu.memory_space<vmem>>, vector<8x8xf32>
    tpu.vector_store %arg5[%c0_10, %c0_11], %12 {strides = array<i32>} : memref<8x8xf32, #tpu.memory_space<vmem>>, vector<8x8xf32>,
    return
  }
  func.func @transform_0(%arg0: i32) -> (i32, i32) {
    %c0_i32 = arith.constant 0 : i32
    %c0_i32_0 = arith.constant 0 : i32
    return %c0_i32, %arg0 : i32, i32
  }
  func.func @transform_1(%arg0: i32) -> (i32, i32) {
    %c0_i32 = arith.constant 0 : i32
    %c0_i32_0 = arith.constant 0 : i32
    %c0_i32_1 = arith.constant 0 : i32
    return %c0_i32, %c0_i32_0 : i32, i32
  }
  func.func @transform_2(%arg0: i32) -> (i32, i32) {
    %c0_i32 = arith.constant 0 : i32
    %c0_i32_0 = arith.constant 0 : i32
    %c0_i32_1 = arith.constant 0 : i32
    return %c0_i32, %c0_i32_0 : i32, i32
  }
  func.func @transform_3(%arg0: i32) -> (i32, i32) {
    %c0_i32 = arith.constant 0 : i32
    %c0_i32_0 = arith.constant 0 : i32
    %c0_i32_1 = arith.constant 0 : i32
    return %c0_i32, %c0_i32_0 : i32, i32
  }
  func.func @transform_4(%arg0: i32) -> (i32, i32) {
    %c0_i32 = arith.constant 0 : i32
    %c0_i32_0 = arith.constant 0 : i32
    return %c0_i32, %arg0 : i32, i32
  }
}

</mosaic_0001>

<bundles_post_ra>
// kernel: actor_critic_forward.1
= control target key start
LH: loop header
LB: loop body
LE: loop exit
PB: predicated region body
PF: predicated region fallthrough
CT: control target
= control target key end

     0   :  { %vm132_vm0 = vcmask 130048   ;;  %v572_v3 = vmov 0   ;;  %v573_v37 = vmov 0.0|0.0   ;;  %vm574_vm1 = vmmov 0   ;;  %s736_s0 = inlined_call_operand.vmem [shape: f32[16,8], index: 0, kind: input, shape index: {}]   ;;  %s737_s1 = inlined_call_operand.vmem [shape: f32[128,16], index: 1, kind: input, shape index: {}]   ;;  %s738_s3 = inlined_call_operand.vmem [shape: f32[136,1], index: 3, kind: input, shape index: {}]   ;;  %s739_s2 = inlined_call_operand.vmem [shape: f32[8,128], index: 2, kind: input, shape index: {}]   ;;  %s740_s4 = inlined_call_operand.vmem [shape: f32[8,8], index: 4, kind: output, shape index: {}]  }
   0x1   :  { %v50_v0 = vld [vmem:[%s736_s0] sm:$0xff]  ;;  %v51_v1 = vld [vmem:[%s736_s0 + $0x8] sm:$0xff]  ;;  %570 = vset.pattern.permute.xlu0 %v572_v3  ;;  %571 = vset.pattern.permute.xlu1 %v572_v3  ;;  %v36_v6 = vld [vmem:[%s737_s1 + $0x10] sm:$0xff]  ;;  %v575_v38 = vmov 0.0   ;;  %vm418_vm2 = vcmask 64512  }
   0x2   :  { %v34_v2 = vld [vmem:[%s737_s1] sm:$0xff]  ;;  %v538_v4 = vpack.c.bf16 %v51_v1, %v50_v0  ;;  %v35_v5 = vld [vmem:[%s737_s1 + $0x8] sm:$0xff]  ;;  %v19_v8 = vld [vmem:[%s738_s3 + $0x10] sm:$0xff]  ;;  %542 = vmatprep.subr.bf16.mxu1 %v573_v37  ;;  %535 = vmatprep.mubr.msk.f32.mxu1 %vm574_vm1, %v575_v38 }
   0x3   :  { %479 = vmatprep.mubr.msk.f32.mxu0 %vm132_vm0, %v34_v2  ;;  %v17_v7 = vld [vmem:[%s738_s3] sm:$0xff]  ;;  %v37_v9 = vld [vmem:[%s737_s1 + $0x18] sm:$0xff]  ;;  %v18_v10 = vld [vmem:[%s738_s3 + $0x8] sm:$0xff]  ;;  %64 = vperm.xlu1 %571, %v19_v8  }
   0x4   :  { %539 = vmatprep.subr.bf16.mxu0 %v538_v4  ;;  %54 = vperm.xlu0 %570, %v17_v7   ;;  %v38_v11 = vld [vmem:[%s737_s1 + $0x20] sm:$0xff]  ;;  %v20_v12 = vld [vmem:[%s738_s3 + $0x18] sm:$0xff]  ;;  %v39_v13 = vld [vmem:[%s737_s1 + $0x28] sm:$0xff] }
   0x5   :  { %541 = vmatpush3.bf16.msra.mxu0 %v538_v4  ;;  %v21_v14 = vld [vmem:[%s738_s3 + $0x20] sm:$0xff]  ;;  %v40_v15 = vld [vmem:[%s737_s1 + $0x30] sm:$0xff]  ;;  %v22_v16 = vld [vmem:[%s738_s3 + $0x28] sm:$0xff] }
   0x6   :  { %v41_v17 = vld [vmem:[%s737_s1 + $0x38] sm:$0xff]  ;;  %v23_v18 = vld [vmem:[%s738_s3 + $0x30] sm:$0xff]  ;;  %v42_v19 = vld [vmem:[%s737_s1 + $0x40] sm:$0xff] }
   0x7   :  { %69 = vperm.xlu1 %571, %v20_v12   ;;  %v24_v20 = vld [vmem:[%s738_s3 + $0x38] sm:$0xff]  ;;  %v43_v21 = vld [vmem:[%s737_s1 + $0x48] sm:$0xff]  ;;  %v25_v22 = vld [vmem:[%s738_s3 + $0x40] sm:$0xff] }
   0x8   :  { %480 = vmatmul.mubr.msk.f32.vlgmr.msra.gmra.mrb[0].mxu0 %vm132_vm0, %v35_v5  ;;  %59 = vperm.xlu0 %570, %v18_v10   ;;  %v44_v23 = vld [vmem:[%s737_s1 + $0x50] sm:$0xff]  ;;  %v26_v24 = vld [vmem:[%s738_s3 + $0x48] sm:$0xff]  ;;  %v45_v25 = vld [vmem:[%s737_s1 + $0x58] sm:$0xff] }
   0x9   :  { %482 = vmatprep.mubr.msk.f32.mxu0 %vm132_vm0, %v36_v6  ;;  %v27_v26 = vld [vmem:[%s738_s3 + $0x50] sm:$0xff]  ;;  %v46_v27 = vld [vmem:[%s737_s1 + $0x60] sm:$0xff]  ;;  %v28_v28 = vld [vmem:[%s738_s3 + $0x58] sm:$0xff] }
   0xa   :  { %v47_v29 = vld [vmem:[%s737_s1 + $0x68] sm:$0xff]  ;;  %v29_v30 = vld [vmem:[%s738_s3 + $0x60] sm:$0xff]  ;;  %v48_v31 = vld [vmem:[%s737_s1 + $0x70] sm:$0xff] }
   0xb   :  { %79 = vperm.xlu1 %571, %v22_v16   ;;  %v30_v32 = vld [vmem:[%s738_s3 + $0x68] sm:$0xff]  ;;  %v49_v33 = vld [vmem:[%s737_s1 + $0x78] sm:$0xff]  ;;  %v31_v34 = vld [vmem:[%s738_s3 + $0x70] sm:$0xff] }
   0xc   :  { %483 = vmatmul.mubr.msk.f32.gmra.mrb[2].mxu0 %vm132_vm0, %v37_v9  ;;  %74 = vperm.xlu0 %570, %v21_v14   ;;  %v32_v35 = vld [vmem:[%s738_s3 + $0x78] sm:$0xff]  ;;  %v33_v36 = vld [vmem:[%s738_s3 + $0x80] sm:$0xff] }
   0xd   :  { %485 = vmatprep.mubr.msk.f32.mxu0 %vm132_vm0, %v38_v11 }
   0xf   :  { %89 = vperm.xlu1 %571, %v24_v20  }
  0x10   :  { %486 = vmatmul.mubr.msk.f32.gmra.mrb[4].mxu0 %vm132_vm0, %v39_v13  ;;  %84 = vperm.xlu0 %570, %v23_v18  }
  0x11   :  { %488 = vmatprep.mubr.msk.f32.mxu0 %vm132_vm0, %v40_v15 }
  0x13   :  { %99 = vperm.xlu1 %571, %v26_v24  }
  0x14   :  { %489 = vmatmul.mubr.msk.f32.gmra.mrb[6].mxu0 %vm132_vm0, %v41_v17  ;;  %94 = vperm.xlu0 %570, %v25_v22  }
  0x15   :  { %491 = vmatprep.mubr.msk.f32.mxu0 %vm132_vm0, %v42_v19 }
  0x17   :  { %109 = vperm.xlu1 %571, %v28_v28  }
  0x18   :  { %492 = vmatmul.mubr.msk.f32.gmra.mrb[8].mxu0 %vm132_vm0, %v43_v21  ;;  %104 = vperm.xlu0 %570, %v27_v26  }
  0x19   :  { %494 = vmatprep.mubr.msk.f32.mxu0 %vm132_vm0, %v44_v23 }
  0x1b   :  { %119 = vperm.xlu1 %571, %v30_v32  }
  0x1c   :  { %495 = vmatmul.mubr.msk.f32.gmra.mrb[10].mxu0 %vm132_vm0, %v45_v25  ;;  %114 = vperm.xlu0 %570, %v29_v30  }
  0x1d   :  { %497 = vmatprep.mubr.msk.f32.mxu0 %vm132_vm0, %v46_v27 }
  0x1f   :  { %129 = vperm.xlu1 %571, %v32_v35  }
  0x20   :  { %498 = vmatmul.mubr.msk.f32.gmra.mrb[12].mxu0 %vm132_vm0, %v47_v29  ;;  %124 = vperm.xlu0 %570, %v31_v34  }
  0x21   :  { %500 = vmatprep.mubr.msk.f32.mxu0 %vm132_vm0, %v48_v31 }
  0x24   :  { %501 = vmatmul.mubr.msk.f32.gmra.mrb[14].mxu0 %vm132_vm0, %v49_v33  ;;  %345 = vperm.xlu0 %570, %v33_v36  }
  0x82   :  { %v65_v39 = vpop.permute.xlu1 %64 }
  0x83   :  { %v55_v40 = vpop.permute.xlu0 %54 }
  0x86   :  { %v70_v41 = vpop.permute.xlu1 %69 }
  0x87   :  { %v60_v42 = vpop.permute.xlu0 %59 }
  0x8a   :  { %v80_v43 = vpop.permute.xlu1 %79 }
  0x8b   :  { %v75_v44 = vpop.permute.xlu0 %74 }
  0x8e   :  { %v90_v50 = vpop.permute.xlu1 %89 }
  0x8f   :  { %v85_v53 = vpop.permute.xlu0 %84 }
  0x92   :  { %v100_v63 = vpop.permute.xlu1 %99 }
  0x93   :  { %v95_v2 = vpop.permute.xlu0 %94 }
  0x96   :  { %v110_v11 = vpop.permute.xlu1 %109 }
  0x97   :  { %v105_v14 = vpop.permute.xlu0 %104 }
  0x9a   :  { %v120_v24 = vpop.permute.xlu1 %119 }
  0x9b   :  { %v115_v27 = vpop.permute.xlu0 %114 }
  0x9e   :  { %v130_v36 = vpop.permute.xlu1 %129 }
  0xdb   :  { %v481_v45 = vpop.f32.mrb[0].mxu0 }
  0xdc   :  { %v253_v46 = vadd.f32 %v481_v45, %v60_v42  ;;  %v247_v47 = vpop.f32.mrb[1].mxu0 }
  0xdd   :  { %v248_v48 = vadd.f32 %v247_v47, %v55_v40  ;;  %v125_v40 = vpop.permute.xlu0 %124 }
  0xde   :  { %v327_v49 = vmax.f32 %v253_v46, 0.0 }
  0xdf   :  { %v326_v51 = vmax.f32 %v248_v48, 0.0  ;;  %v484_v52 = vpop.f32.mrb[2].mxu0  ;;  %v342_v48 = vld [vmem:[%s739_s2] sm:$0xff] }
  0xe0   :  { %v263_v54 = vadd.f32 %v484_v52, %v70_v41  ;;  %v257_v55 = vpop.f32.mrb[3].mxu0 }
  0xe1   :  { %v258_v56 = vadd.f32 %v257_v55, %v65_v39  ;;  %v543_v57 = vpack.c.bf16 %v327_v49, %v326_v51  ;;  %v346_v49 = vpop.permute.xlu0 %345 }
  0xe2   :  { %v329_v58 = vmax.f32 %v263_v54, 0.0 }
  0xe3   :  { %v328_v59 = vmax.f32 %v258_v56, 0.0  ;;  %v487_v60 = vpop.f32.mrb[4].mxu0  ;;  %544 = vmatpush3.bf16.msra.mxu1 %v543_v57 }
  0xe4   :  { %v273_v61 = vadd.f32 %v487_v60, %v80_v43  ;;  %v267_v62 = vpop.f32.mrb[5].mxu0  ;;  %545 = vmatprep.subr.bf16.mxu1 %v573_v37 }
  0xe5   :  { %v546_v0 = vpack.c.bf16 %v329_v58, %v328_v59  ;;  %v268_v1 = vadd.f32 %v267_v62, %v75_v44 }
  0xe6   :  { %v331_v3 = vmax.f32 %v273_v61, 0.0 }
  0xe7   :  { %v330_v4 = vmax.f32 %v268_v1, 0.0  ;;  %v490_v5 = vpop.f32.mrb[6].mxu0  ;;  %547 = vmatpush3.bf16.msra.mxu1 %v546_v0 }
  0xe8   :  { %v283_v6 = vadd.f32 %v490_v5, %v90_v50  ;;  %v277_v7 = vpop.f32.mrb[7].mxu0  ;;  %548 = vmatprep.subr.bf16.mxu1 %v573_v37 }
  0xe9   :  { %v549_v8 = vpack.c.bf16 %v331_v3, %v330_v4  ;;  %v278_v9 = vadd.f32 %v277_v7, %v85_v53 }
  0xea   :  { %v333_v10 = vmax.f32 %v283_v6, 0.0 }
  0xeb   :  { %v332_v12 = vmax.f32 %v278_v9, 0.0  ;;  %v493_v13 = vpop.f32.mrb[8].mxu0  ;;  %550 = vmatpush3.bf16.msra.mxu1 %v549_v8 }
  0xec   :  { %v293_v15 = vadd.f32 %v493_v13, %v100_v63  ;;  %v287_v16 = vpop.f32.mrb[9].mxu0  ;;  %551 = vmatprep.subr.bf16.mxu1 %v573_v37 }
  0xed   :  { %v552_v17 = vpack.c.bf16 %v333_v10, %v332_v12  ;;  %v288_v18 = vadd.f32 %v287_v16, %v95_v2 }
  0xee   :  { %v335_v19 = vmax.f32 %v293_v15, 0.0 }
  0xef   :  { %v334_v20 = vmax.f32 %v288_v18, 0.0  ;;  %v496_v21 = vpop.f32.mrb[10].mxu0  ;;  %553 = vmatpush3.bf16.msra.mxu1 %v552_v17 }
  0xf0   :  { %v303_v22 = vadd.f32 %v496_v21, %v110_v11  ;;  %v297_v23 = vpop.f32.mrb[11].mxu0  ;;  %554 = vmatprep.subr.bf16.mxu1 %v573_v37 }
  0xf1   :  { %v555_v25 = vpack.c.bf16 %v335_v19, %v334_v20  ;;  %v298_v26 = vadd.f32 %v297_v23, %v105_v14 }
  0xf2   :  { %v337_v28 = vmax.f32 %v303_v22, 0.0 }
  0xf3   :  { %v336_v29 = vmax.f32 %v298_v26, 0.0  ;;  %v499_v30 = vpop.f32.mrb[12].mxu0  ;;  %556 = vmatpush3.bf16.msra.mxu1 %v555_v25 }
  0xf4   :  { %v313_v31 = vadd.f32 %v499_v30, %v120_v24  ;;  %v307_v32 = vpop.f32.mrb[13].mxu0  ;;  %557 = vmatprep.subr.bf16.mxu1 %v573_v37 }
  0xf5   :  { %v558_v33 = vpack.c.bf16 %v337_v28, %v336_v29  ;;  %v308_v34 = vadd.f32 %v307_v32, %v115_v27 }
  0xf6   :  { %v339_v35 = vmax.f32 %v313_v31, 0.0 }
  0xf7   :  { %v338_v38 = vmax.f32 %v308_v34, 0.0  ;;  %v502_v39 = vpop.f32.mrb[14].mxu0  ;;  %559 = vmatpush3.bf16.msra.mxu1 %v558_v33 }
  0xf8   :  { %v323_v41 = vadd.f32 %v502_v39, %v130_v36  ;;  %v317_v42 = vpop.f32.mrb[15].mxu0  ;;  %560 = vmatprep.subr.bf16.mxu1 %v573_v37 }
  0xf9   :  { %v561_v43 = vpack.c.bf16 %v339_v35, %v338_v38  ;;  %v318_v44 = vadd.f32 %v317_v42, %v125_v40 }
  0xfa   :  { %v341_v45 = vmax.f32 %v323_v41, 0.0 }
  0xfb   :  { %v340_v46 = vmax.f32 %v318_v44, 0.0  ;;  %562 = vmatpush3.bf16.msra.mxu1 %v561_v43 }
  0xfc   :  { %563 = vmatprep.subr.bf16.mxu1 %v573_v37 }
  0xfd   :  { %v564_v47 = vpack.c.bf16 %v341_v45, %v340_v46 }
  0xff   :  { %565 = vmatpush3.bf16.msra.mxu1 %v564_v47 }
 0x102   :  { %536 = vmatmul.mubr.f32.vlgmr.msra.gmra.mrb[0].mxu1 %v342_v48 }
 0x1d5   :  { %v414_v50 = vpop.f32.mrb[0].mxu1 }
 0x1d6   :  { %v415_v51 = vadd.f32 %v414_v50, %v346_v49  ;;  %v537_v52 = vpop.f32.mrb[1].mxu1 }
 0x1d8   :  { %419 = vst.msk [vmem:[%s740_s4] sm:$0xff] %vm418_vm2, %v415_v51 }

</bundles_post_ra>
